<compile_context>
chip_gen: v7x
topology: tpu7x:2x2x1
jax: 0.10.0
libtpu: 0.0.40
codegen_flags: <defaults>
</compile_context>

<pallas_src>
import functools

import jax
import jax.numpy as jnp
from jax.experimental import pallas as pl
from jax.experimental.pallas import tpu as pltpu

_LANE = 128
_SUBLANE = 8


def _round_up(x, m):
    return ((x + m - 1) // m) * m


def _pick_batch_tile(batch, max_tile=256):
    """Pick a batch tile (multiple of 8, <= max_tile) that minimizes padded
    rows, prefers >= 2 grid tiles for batch >= 16 (v7x megacore sharding),
    then prefers larger tiles (fewer grid steps)."""
    best_key, best = None, None
    for tb in range(_SUBLANE, max_tile + 1, _SUBLANE):
        padded = _round_up(batch, tb)
        tiles = padded // tb
        waste = padded - batch
        key = (waste, 0 if (batch < 16 or tiles >= 2) else 1, -tb)
        if best_key is None or key < best_key:
            best_key, best = key, (tb, padded)
    return best


# ----------------------------------------------------------------------------
# Fused kernel. Grid = (batch_tiles, n_layers); the layer axis is innermost
# and "arbitrary", so weights stream layer-by-layer (double-buffered by the
# Pallas pipeline) while activations stay resident in the VMEM scratch.
#   x_ref : [TB, in_pad]        f32   (lane-padded input rows, block idx i)
#   w_ref : [1, D, D]           bf16  (weights of layer l, zero-padded)
#   b_ref : [1, 1, D]           f32   (bias of layer l, zero-padded)
#   o_ref : [TB, out_pad]       f32   (written only on the last layer step)
#   h_ref : [TB, D]             f32   (persistent activation scratch)
# ----------------------------------------------------------------------------
def _fused_mlp_kernel(x_ref, w_ref, b_ref, o_ref, h_ref, *,
                      n_layers, in_pad, out_pad):
    l = pl.program_id(1)
    b = b_ref[0]                                    # [1, D] f32, read once

    @pl.when(l == 0)
    def _():                                        # first layer: skinny K
        y = jnp.dot(x_ref[...].astype(jnp.bfloat16),
                    w_ref[0, :in_pad, :],           # static K-dim slice
                    preferred_element_type=jnp.float32)
        h_ref[...] = jnp.maximum(y + b, 0.0)        # bias + ReLU in f32 (VPU)

    @pl.when(l > 0)
    def _():                                        # hidden / output layers
        y = jnp.dot(h_ref[...].astype(jnp.bfloat16), w_ref[0],
                    preferred_element_type=jnp.float32)
        h_ref[...] = jnp.maximum(y + b, 0.0)

    @pl.when(l == n_layers - 1)
    def _():                                        # lane-trimmed writeback
        o_ref[...] = h_ref[:, :out_pad].astype(o_ref.dtype)


# ----------------------------------------------------------------------------
# Parameter init: Xavier-uniform with gain('tanh') = 5/3, zero bias
# (matches NeuralNetReLu.init_xavier; seeded with the JAX PRNG — synthetic).
# Weights are stored [in, out] (transpose of torch's [out, in]).
# ----------------------------------------------------------------------------
def _xavier_uniform(key, fan_in, fan_out, gain):
    limit = gain * jnp.sqrt(6.0 / (fan_in + fan_out))
    return jax.random.uniform(
        key, (fan_in, fan_out), dtype=jnp.float32, minval=-limit, maxval=limit
    )


def init_params(key, input_dimension, output_dimension, n_hidden_layers, neurons):
    gain = 5.0 / 3.0  # nn.init.calculate_gain('tanh')
    dims = (
        [(input_dimension, neurons)]
        + [(neurons, neurons) for _ in range(n_hidden_layers - 1)]
        + [(neurons, output_dimension)]
    )
    params = []
    for fan_in, fan_out in dims:
        key, sub = jax.random.split(key)
        w = _xavier_uniform(sub, fan_in, fan_out, gain)
        b = jnp.zeros((fan_out,), dtype=jnp.float32)
        params.append((w, b))
    return params


def pack_params(params):
    """Stack per-layer (w, b) into padded, kernel-ready arrays.

    Returns (w_stack bf16 [L, D, D], b_stack f32 [L, 1, D], D) where D is the
    max layer width rounded up to a multiple of 128; padding is zero so padded
    lanes contribute nothing to any relu(h @ W + b)."""
    dims = [params[0][0].shape[0]] + [w.shape[1] for w, _ in params]
    pad_dim = _round_up(max(dims), _LANE)
    n_layers = len(params)
    w_stack = jnp.zeros((n_layers, pad_dim, pad_dim), dtype=jnp.bfloat16)
    b_stack = jnp.zeros((n_layers, 1, pad_dim), dtype=jnp.float32)
    for l, (w, b) in enumerate(params):
        fi, fo = w.shape
        w_stack = w_stack.at[l, :fi, :fo].set(w.astype(jnp.bfloat16))
        b_stack = b_stack.at[l, 0, :fo].set(b)
    return w_stack, b_stack, pad_dim


# ----------------------------------------------------------------------------
# Forward pass: relu applied after every layer, including the output layer.
# ----------------------------------------------------------------------------
@functools.partial(jax.jit, static_argnames=("out_dim", "max_batch_tile"))
def neural_net_relu_forward(w_stack, b_stack, x, *, out_dim, max_batch_tile=256):
    n_layers, pad_dim, _ = w_stack.shape
    batch, in_dim = x.shape
    in_pad = _round_up(in_dim, _LANE)
    out_pad = _round_up(out_dim, _LANE)

    tb, batch_pad = _pick_batch_tile(batch, max_batch_tile)

    # Pad the input only to [batch_pad, in_pad] (no pad_dim read amplification).
    x_pad = jnp.zeros((batch_pad, in_pad), jnp.float32).at[:batch, :in_dim].set(x)

    # Explicit scoped-VMEM budget (defaults are 16/32 MiB; cap below v7x's
    # 64 MiB physical VMEM).
    vmem_bytes = (
        2 * tb * in_pad * 4            # x block, double-buffered
        + 2 * pad_dim * pad_dim * 2    # per-layer weight block, double-buffered
        + 2 * pad_dim * 4              # bias block
        + 2 * tb * out_pad * 4         # output block
        + tb * pad_dim * 4             # activation scratch
    )
    vmem_limit = int(min(max(4 * vmem_bytes, 32 << 20), 48 << 20))

    cost = pl.CostEstimate(
        flops=2 * batch_pad * pad_dim * (in_pad + (n_layers - 1) * pad_dim),
        transcendentals=0,
        bytes_accessed=(w_stack.size * 2 + b_stack.size * 4
                        + x_pad.size * 4 + batch_pad * out_pad * 4),
    )

    out_padded = pl.pallas_call(
        functools.partial(_fused_mlp_kernel, n_layers=n_layers,
                          in_pad=in_pad, out_pad=out_pad),
        out_shape=jax.ShapeDtypeStruct((batch_pad, out_pad), jnp.float32),
        grid_spec=pltpu.PrefetchScalarGridSpec(
            num_scalar_prefetch=0,
            grid=(batch_pad // tb, n_layers),        # layers = innermost axis
            in_specs=[
                pl.BlockSpec((tb, in_pad), lambda i, l: (i, 0)),
                pl.BlockSpec((1, pad_dim, pad_dim), lambda i, l: (l, 0, 0)),
                pl.BlockSpec((1, 1, pad_dim), lambda i, l: (l, 0, 0)),
            ],
            out_specs=pl.BlockSpec((tb, out_pad), lambda i, l: (i, 0)),
            scratch_shapes=[pltpu.VMEM((tb, pad_dim), jnp.float32)],
        ),
        compiler_params=pltpu.CompilerParams(
            dimension_semantics=("parallel", "arbitrary"),
            vmem_limit_bytes=vmem_limit,
        ),
        cost_estimate=cost,
    )(x_pad, w_stack, b_stack)

    return out_padded[:batch, :out_dim]


if __name__ == "__main__":
    # Small, deterministic example consistent with the module's constructor.
    input_dimension = 4
    output_dimension = 2
    n_hidden_layers = 3
    neurons = 32
    batch = 8

    key = jax.random.PRNGKey(0)
    key_params, key_x = jax.random.split(key)

    params = init_params(
        key_params, input_dimension, output_dimension, n_hidden_layers, neurons
    )
    w_stack, b_stack, _ = pack_params(params)
    x = jax.random.normal(key_x, (batch, input_dimension), dtype=jnp.float32)

    out = neural_net_relu_forward(w_stack, b_stack, x, out_dim=output_dimension)
    jax.block_until_ready(out)

    # Reference with matching numerics (bf16 weights/activations into the dot,
    # f32 accumulation, f32 bias + ReLU) — same as the fused kernel.
    ref = x
    for w, b in params:
        ref = jnp.maximum(
            jnp.dot(ref.astype(jnp.bfloat16), w.astype(jnp.bfloat16),
                    preferred_element_type=jnp.float32) + b,
            0.0,
        )

    assert out.shape == (batch, output_dimension)
    assert jnp.allclose(out, ref, atol=1e-3, rtol=1e-3)

    # Loose sanity check against the pure-f32 reference (bf16 weights only
    # change low-order bits at these scales).
    # TODO(synk): keep f32 weights (or 3-pass bf16 / precision=HIGHEST dot) if
    # strict f32 parity with the PyTorch module is required.
    ref_f32 = x
    for w, b in params:
        ref_f32 = jnp.maximum(ref_f32 @ w + b, 0.0)
    assert jnp.allclose(out, ref_f32, atol=5e-2, rtol=5e-2)

    print("KERNEL_OK")
</pallas_src>

<mosaic_0001>
module attributes {stable_mosaic.version = 11 : i64} {
  func.func @_fused_mlp_kernel(%arg0: i32, %arg1: i32, %arg2: memref<8x128xf32, #tpu.memory_space<vmem>>, %arg3: memref<1x128x128xbf16, #tpu.memory_space<vmem>>, %arg4: memref<1x1x128xf32, #tpu.memory_space<vmem>>, %arg5: memref<8x128xf32, #tpu.memory_space<vmem>>, %arg6: memref<8x128xf32, #tpu.memory_space<vmem>>) attributes {dimension_semantics = [#tpu.dimension_semantics<parallel>, #tpu.dimension_semantics<arbitrary>], iteration_bounds = array<i64: 1, 4>, scalar_prefetch = 0 : i64, scratch_operands = 1 : i64, tpu.core_type = #tpu.core_type<tc>, window_params = [{transform_indices = @transform_0, window_bounds = array<i64: 8, 128>}, {transform_indices = @transform_1, window_bounds = array<i64: 1, 128, 128>}, {transform_indices = @transform_2, window_bounds = array<i64: 1, 1, 128>}, {transform_indices = @transform_3, window_bounds = array<i64: 8, 128>}]} {
    %c0 = arith.constant 0 : index
    %c0_0 = arith.constant 0 : index
    %c0_1 = arith.constant 0 : index
    %0 = vector.load %arg4[%c0, %c0_0, %c0_1] : memref<1x1x128xf32, #tpu.memory_space<vmem>>, vector<1x1x128xf32>
    %1 = vector.shape_cast %0 : vector<1x1x128xf32> to vector<1x128xf32>
    %c0_i32 = arith.constant 0 : i32
    %2 = arith.cmpi eq, %arg1, %c0_i32 : i32
    %3 = arith.extui %2 : i1 to i32
    %c0_i32_2 = arith.constant 0 : i32
    %4 = arith.cmpi ne, %3, %c0_i32_2 : i32
    scf.if %4 {
      %c0_6 = arith.constant 0 : index
      %c0_7 = arith.constant 0 : index
      %11 = vector.load %arg2[%c0_6, %c0_7] : memref<8x128xf32, #tpu.memory_space<vmem>>, vector<8x128xf32>
      %12 = arith.truncf %11 : vector<8x128xf32> to vector<8x128xbf16>
      %c0_8 = arith.constant 0 : index
      %c0_9 = arith.constant 0 : index
      %c0_10 = arith.constant 0 : index
      %13 = vector.load %arg3[%c0_8, %c0_9, %c0_10] : memref<1x128x128xbf16, #tpu.memory_space<vmem>>, vector<1x128x128xbf16>
      %14 = vector.shape_cast %13 : vector<1x128x128xbf16> to vector<128x128xbf16>
      %cst = arith.constant dense<0.000000e+00> : vector<8x128xf32>
      %15 = tpu.matmul %12, %14, %cst {dimension_numbers = #tpu.dot_dimension_numbers<[1], [0], [0], [1], [0, 0, 1, 1], [], []>} : vector<8x128xbf16>, vector<128x128xbf16>, vector<8x128xf32> -> vector<8x128xf32>
      %16 = vector.broadcast %1 : vector<1x128xf32> to vector<8x128xf32>
      %17 = arith.addf %15, %16 : vector<8x128xf32>
      %cst_11 = arith.constant 0.000000e+00 : f32
      %18 = vector.broadcast %cst_11 : f32 to vector<8x128xf32>
      %19 = arith.maximumf %17, %18 : vector<8x128xf32>
      %c0_12 = arith.constant 0 : index
      %c0_13 = arith.constant 0 : index
      %20 = vector.load %arg6[%c0_12, %c0_13] : memref<8x128xf32, #tpu.memory_space<vmem>>, vector<8x128xf32>
      tpu.vector_store %arg6[%c0_12, %c0_13], %19 {strides = array<i32>} : memref<8x128xf32, #tpu.memory_space<vmem>>, vector<8x128xf32>,
    } else {
    }
    %c0_i32_3 = arith.constant 0 : i32
    %5 = arith.cmpi sgt, %arg1, %c0_i32_3 : i32
    %6 = arith.extui %5 : i1 to i32
    %c0_i32_4 = arith.constant 0 : i32
    %7 = arith.cmpi ne, %6, %c0_i32_4 : i32
    scf.if %7 {
      %c0_6 = arith.constant 0 : index
      %c0_7 = arith.constant 0 : index
      %11 = vector.load %arg6[%c0_6, %c0_7] : memref<8x128xf32, #tpu.memory_space<vmem>>, vector<8x128xf32>
      %12 = arith.truncf %11 : vector<8x128xf32> to vector<8x128xbf16>
      %c0_8 = arith.constant 0 : index
      %c0_9 = arith.constant 0 : index
      %c0_10 = arith.constant 0 : index
      %13 = vector.load %arg3[%c0_8, %c0_9, %c0_10] : memref<1x128x128xbf16, #tpu.memory_space<vmem>>, vector<1x128x128xbf16>
      %14 = vector.shape_cast %13 : vector<1x128x128xbf16> to vector<128x128xbf16>
      %cst = arith.constant dense<0.000000e+00> : vector<8x128xf32>
      %15 = tpu.matmul %12, %14, %cst {dimension_numbers = #tpu.dot_dimension_numbers<[1], [0], [0], [1], [0, 0, 1, 1], [], []>} : vector<8x128xbf16>, vector<128x128xbf16>, vector<8x128xf32> -> vector<8x128xf32>
      %16 = vector.broadcast %1 : vector<1x128xf32> to vector<8x128xf32>
      %17 = arith.addf %15, %16 : vector<8x128xf32>
      %cst_11 = arith.constant 0.000000e+00 : f32
      %18 = vector.broadcast %cst_11 : f32 to vector<8x128xf32>
      %19 = arith.maximumf %17, %18 : vector<8x128xf32>
      %c0_12 = arith.constant 0 : index
      %c0_13 = arith.constant 0 : index
      %20 = vector.load %arg6[%c0_12, %c0_13] : memref<8x128xf32, #tpu.memory_space<vmem>>, vector<8x128xf32>
      tpu.vector_store %arg6[%c0_12, %c0_13], %19 {strides = array<i32>} : memref<8x128xf32, #tpu.memory_space<vmem>>, vector<8x128xf32>,
    } else {
    }
    %c3_i32 = arith.constant 3 : i32
    %8 = arith.cmpi eq, %arg1, %c3_i32 : i32
    %9 = arith.extui %8 : i1 to i32
    %c0_i32_5 = arith.constant 0 : i32
    %10 = arith.cmpi ne, %9, %c0_i32_5 : i32
    scf.if %10 {
      %c0_6 = arith.constant 0 : index
      %c0_7 = arith.constant 0 : index
      %11 = vector.load %arg6[%c0_6, %c0_7] : memref<8x128xf32, #tpu.memory_space<vmem>>, vector<8x128xf32>
      %c0_8 = arith.constant 0 : index
      %c0_9 = arith.constant 0 : index
      %12 = vector.load %arg5[%c0_8, %c0_9] : memref<8x128xf32, #tpu.memory_space<vmem>>, vector<8x128xf32>
      tpu.vector_store %arg5[%c0_8, %c0_9], %11 {strides = array<i32>} : memref<8x128xf32, #tpu.memory_space<vmem>>, vector<8x128xf32>,
    } else {
    }
    return
  }
  func.func @transform_0(%arg0: i32, %arg1: i32) -> (i32, i32) {
    %c0_i32 = arith.constant 0 : i32
    %c0_i32_0 = arith.constant 0 : i32
    return %arg0, %c0_i32 : i32, i32
  }
  func.func @transform_1(%arg0: i32, %arg1: i32) -> (i32, i32, i32) {
    %c0_i32 = arith.constant 0 : i32
    %c0_i32_0 = arith.constant 0 : i32
    %c0_i32_1 = arith.constant 0 : i32
    return %arg1, %c0_i32, %c0_i32_0 : i32, i32, i32
  }
  func.func @transform_2(%arg0: i32, %arg1: i32) -> (i32, i32, i32) {
    %c0_i32 = arith.constant 0 : i32
    %c0_i32_0 = arith.constant 0 : i32
    %c0_i32_1 = arith.constant 0 : i32
    return %arg1, %c0_i32, %c0_i32_0 : i32, i32, i32
  }
  func.func @transform_3(%arg0: i32, %arg1: i32) -> (i32, i32) {
    %c0_i32 = arith.constant 0 : i32
    %c0_i32_0 = arith.constant 0 : i32
    return %arg0, %c0_i32 : i32, i32
  }
}

</mosaic_0001>

<bundles_post_ra>
// kernel: neural_net_relu_forward.1
= control target key start
LH: loop header
LB: loop body
LE: loop exit
PB: predicated region body
PF: predicated region fallthrough
CT: control target
= control target key end

     0   :  { %8 = vsyncpa [#allocation4], 0  ;;  %s1001_s0 = inlined_call_operand.vmem [shape: f32[8,128], index: 0, kind: input, shape index: {}]   ;;  %s1002_s1 = inlined_call_operand.hbm [shape: bf16[4,128,128], index: 1, kind: input, shape index: {}]   ;;  %s1003_s2 = inlined_call_operand.vmem [shape: f32[4,1,128], index: 2, kind: input, shape index: {}]   ;;  %s1004_s3 = inlined_call_operand.vmem [shape: f32[8,128], index: 3, kind: output, shape index: {}]  }
   0x1   :  { %10 = vsyncpa [#allocation4 + $0x1], 0  ;;  %s846_s12 = smov 0   ;;  %s848_s13 = smov 0  }
   0x2   :  { %s850_s14 = smov 0   ;;  %s852_s15 = smov 0  }
   0x3   :  { %s854_s16 = smov 0   ;;  %s856_s17 = smov 0  }
   0x4 LB: > { %s570_s18 = sadd.s32 4294967295, %s817_s17   ;;  %s25_s19 = sadd.s32 1, %s813_s16  ;;  %s817_s17 = sphi %s856_s17, %s16_s17   ;;  %s813_s16 = sphi %s854_s16, %s1012_s16   ;;  %s809_s15 = sphi %s852_s15, %s1011_s15   ;;  %s805_s14 = sphi %s850_s14, %s1010_s14   ;;  %s801_s13 = sphi %s848_s13, %s1009_s13   ;;  %s797_s12 = sphi %s846_s12, %s1008_s12  }
   0x5   : > { %p26_p0 = scmp.ge.s32.totalorder %s25_s19, 4  ;;  %s61_s20 = sadd.s32 1, %s805_s14 }
   0x6   : > { %p68_p1 = scmp.ne.s32.totalorder %s805_s14, %s801_s13  ;;  %p69_p2 = scmp.eq.s32.totalorder %s817_s17, 0 }
   0x7   : > { %s1014_s19 = smov (%p26_p0, %s25_s19), 0  ;;  %p74_p4 = scmp.ne.s32.totalorder %s801_s13, %s797_s12 }
   0x8   : > { %p882_p3 = por %p69_p2, %p68_p1  ;;  %s58_s22 = ssub.s32 %s813_s16, %s1014_s19 }
   0x9   : > { %p75_p5 = scmp.eq.s32.totalorder %s570_s18, 0  ;;  %p59_p6 = scmp.eq.s32.totalorder %s58_s22, 0 }
   0xa   : > { %p666_p8 = scmp.lt.s32.totalorder %s817_s17, 4  ;;  %s157_s25 = sand.u32 1, %s805_s14  }
   0xb   : > { %p889_p7 = por %p75_p5, %p74_p4  ;;  %s601_s26 = sshll.u32 %s813_s16, 10 }
   0xc   : > { %s895_s24 = scalar_select %p59_p6, %s805_s14, %s61_s20  }
   0xd   : > { %s574_s27 = sshll.u32 %s157_s25, 6  ;;  %s902_s30 = scalar_lea.hbm %s1002_s1, %s601_s26 }
   0xe   : > { %s161_s4 = scalar_lea.vmem [#allocation3], %s574_s27  ;;  %p906_p9 = pnand %p666_p8, %p882_p3 }
   0xf   : > { %s168_s5 = sshll.u32 %s161_s4, 4  ;;  %s912_s7 = scalar_lea.sflag [#allocation4], %s157_s25  ;;  %s910_s5 = int_to_ptr.vmem [resolvable:$true] %s168_s5 }
  0x10   : > { %s737_s8 = scalar_lea.hbm %s902_s30, 1024  ;;  %p739_p11 = pneg %p906_p9 }
  0x11   : > { %p738_p10 = scmp.ne.s32.totalorder %s902_s30, %s737_s8  ;;  %s742_s11 = scalar_lea.hbm %s1002_s1, 4096 }
  0x12   : > { %p743_p0 = scmp.lt.u32.totalorder %s902_s30, %s1002_s1  ;;  %p744_p1 = scmp.lt.u32.totalorder %s742_s11, %s737_s8 }
  0x13   : > { %p740_p12 = pnand %p739_p11, %p738_p10  ;;  %p746_p3 = scmp.lt.u32.totalorder %s737_s8, %s902_s30 }
  0x14   : > { %p745_p2 = por %p744_p1, %p743_p0 }
  0x15   : > { %p741_p13 = pneg %p740_p12 }
  0x16   : > { %p747_p4 = por %p746_p3, %p745_p2 }
  0x18   : > { %p748_p5 = pnand %p747_p4, %p741_p13 }
  0x1a   : > { %751 = shalt.err (!%p748_p5)
}
  0x1b   : > { %s752_s20 = scalar_lea.vmem %s910_s5, 1024  ;;  %s819_s21 = smov [#allocation3]  }
  0x1c   : > { %p753_p6 = scmp.ne.s32.totalorder %s910_s5, %s752_s20  ;;  %s757_s22 = sshll.u32 %s819_s21, 4  ;;  %s758_s22 = int_to_ptr.vmem [resolvable:$false] %s757_s22 }
  0x1d   : > { %s759_s25 = scalar_lea.vmem %s758_s22, 2048  ;;  %p760_p12 = scmp.lt.s32.totalorder %s910_s5, %s758_s22 }
  0x1e   : > { %p755_p8 = pnand %p753_p6, %p739_p11  ;;  %p761_p0 = scmp.lt.s32.totalorder %s759_s25, %s752_s20 }
  0x20   : > { %p756_p10 = pneg %p755_p8  ;;  %p762_p1 = por %p761_p0, %p760_p12 }
  0x22   : > { %p763_p2 = pnand %p762_p1, %p756_p10 }
  0x24   : > { %766 = shalt.err (!%p763_p2)
}
  0x25   : > { %s820_s26 = smov 64   ;;  %s821_s27 = smov 4  }
  0x26   : > { %665 = dma.hbm_to_vmem [thread:$0]  (!%p906_p9), %s902_s30, 1024, %s910_s5, %s912_s7, %s820_s26, %s820_s26, %s821_s27  }
  0x27   : > { %p577_p11 = scmp.ge.s32.totalorder %s817_s17, 1  ;;  %p182_p13 = scmp.lt.s32.totalorder %s817_s17, 5 }
  0x29   : > { %p183_p3 = pnand %p577_p11, %p182_p13 }
  0x2a   : > { %s188_s28 = sand.u32 (!%p183_p3), 1, %s801_s13  }
  0x2b   : > { %186 = sbr.rel (%p183_p3) target bundleno = 563 (0x233), region = 32  ;;  %s578_s29 = sshll.u32 (!%p183_p3), %s188_s28, 6 }
  0x2c   : > { %s189_s4 = scalar_lea.sflag (!%p183_p3), [#allocation4], %s188_s28  ;;  %s943_s8 = scalar_lea.vmem (!%p183_p3), [#allocation3], %s578_s29 }
  0x32   : > { %792 = dma.done.wait (%p889_p7), %s189_s4, 1024  }
  0x33   : > { %794 = vsyncadd (%p889_p7), %s189_s4, 4294966272  ;;  %p225_p4 = scmp.lt.s32.totalorder %s809_s15, 3  ;;  %p579_p9 = scmp.ne.s32.totalorder %s809_s15, 0 }
  0x34   : > { %v721_v1 = vld [vmem:[%s943_s8] sm:$0xff] (!%p579_p9)   ;;  %v822_v2 = vmov (!%p579_p9), 0.0   ;;  %v722_v3 = vld [vmem:[%s943_s8 + $0x8] sm:$0xff] (!%p579_p9)   ;;  %vm823_vm0 = vmmov (!%p579_p9), 0   ;;  %v723_v4 = vld [vmem:[%s943_s8 + $0x10] sm:$0xff] (!%p579_p9)   ;;  %v257_v12 = vlaneseq (!%p579_p9) }
  0x35   : > { %s226_s30 = scalar_select %p225_p4, %s809_s15, 3 }
  0x36   : > { %237 = sbr.rel (%p579_p9) target bundleno = 303 (0x12f), region = 40  ;;  %620 = vmatprep.subr.bf16.mxu0 (!%p579_p9), %v822_v2  ;;  %636 = vmatprep.mubr.msk.bf16.mxu0 (!%p579_p9), %vm823_vm0, %v822_v2  ;;  %v724_v5 = vld [vmem:[%s943_s8 + $0x18] sm:$0xff] (!%p579_p9)   ;;  %v725_v6 = vld [vmem:[%s943_s8 + $0x20] sm:$0xff] (!%p579_p9)   ;;  %v726_v7 = vld [vmem:[%s943_s8 + $0x28] sm:$0xff] (!%p579_p9)   ;;  %v258_v13 = vshrl.u32 (!%p579_p9), %v257_v12, 7 }
  0x37   : > { %s227_s7 = scalar_lea.vmem %s1003_s2, %s226_s30  ;;  %621 = vmatpush3.bf16.msra.mxu0 (!%p579_p9), %v721_v1  ;;  %v727_v8 = vld [vmem:[%s943_s8 + $0x30] sm:$0xff] (!%p579_p9)   ;;  %v728_v9 = vld [vmem:[%s943_s8 + $0x38] sm:$0xff] (!%p579_p9)  }
  0x38   : > { %v954_v0 = vld [vmem:[%s227_s7] sm:$0x1]  ;;  %622 = vmatprep.subr.bf16.mxu0 (!%p579_p9), %v822_v2  ;;  %v259_v14 = vsub.s32 (!%p579_p9), 0, %v258_v13 }
  0x39   : > { %v238_v10 = vld [vmem:[%s1001_s0] sm:$0xff] (!%p579_p9) }
  0x3a   : > { %v239_v11 = vpack.c.bf16 (!%p579_p9), %v238_v10, %v238_v10  ;;  %v260_v15 = vrot.slane (!%p579_p9), %v954_v0, %v259_v14 }
  0x3b   : > { %623 = vmatpush3.bf16.msra.mxu0 (!%p579_p9), %v722_v3 }
  0x3c   : > { %624 = vmatprep.subr.bf16.mxu0 (!%p579_p9), %v822_v2 }
  0x3f   : > { %625 = vmatpush3.bf16.msra.mxu0 %v723_v4 }
  0x40   : > { %626 = vmatprep.subr.bf16.mxu0 %v822_v2 }
  0x43   : > { %627 = vmatpush3.bf16.msra.mxu0 %v724_v5 }
  0x44   : > { %628 = vmatprep.subr.bf16.mxu0 %v822_v2 }
  0x47   : > { %629 = vmatpush3.bf16.msra.mxu0 %v725_v6 }
  0x48   : > { %630 = vmatprep.subr.bf16.mxu0 %v822_v2 }
  0x4b   : > { %631 = vmatpush3.bf16.msra.mxu0 %v726_v7 }
  0x4c   : > { %632 = vmatprep.subr.bf16.mxu0 %v822_v2 }
  0x4f   : > { %633 = vmatpush3.bf16.msra.mxu0 %v727_v8 }
  0x50   : > { %634 = vmatprep.subr.bf16.mxu0 %v822_v2 }
  0x53   : > { %635 = vmatpush3.bf16.msra.mxu0 %v728_v9 }
  0x56   : > { %637 = vmatmul.mubr.bf16.vlgmr.msra.gmra.mrb[0].mxu0 %v239_v11 }
 0x129   : > { %v344_v16 = vpop.f32.mrb[0].mxu0 }
 0x12a   : > { %v345_v17 = vadd.f32 %v344_v16, %v260_v15  ;;  %v638_v18 = vpop.f32.mrb[1].mxu0 }
 0x12b   : > { %v347_v19 = vpop.f32.mrb[2].mxu0 }
 0x12c   : > { %v350_v20 = vmax.f32 %v345_v17, 0.0  ;;  %v639_v21 = vpop.f32.mrb[3].mxu0 }
 0x12e   : > { %351 = vst [vmem:[#allocation2] sm:$0xff] %v350_v20 }
 0x12f PF: > { %p588_p7 = scmp.le.s32.totalorder %s809_s15, 0 }
 0x130   : > { %v729_v22 = vld [vmem:[%s943_s8] sm:$0xff] (!%p588_p7)   ;;  %v824_v23 = vmov (!%p588_p7), 0.0   ;;  %v730_v24 = vld [vmem:[%s943_s8 + $0x8] sm:$0xff] (!%p588_p7)   ;;  %vm825_vm1 = vmmov (!%p588_p7), 0   ;;  %v731_v25 = vld [vmem:[%s943_s8 + $0x10] sm:$0xff] (!%p588_p7)   ;;  %v375_v33 = vlaneseq (!%p588_p7) }
 0x131   : > { %355 = sbr.rel (%p588_p7) target bundleno = 554 (0x22a), region = 44  ;;  %640 = vmatprep.subr.bf16.mxu0 (!%p588_p7), %v824_v23  ;;  %656 = vmatprep.mubr.msk.bf16.mxu0 (!%p588_p7), %vm825_vm1, %v824_v23  ;;  %v732_v26 = vld [vmem:[%s943_s8 + $0x18] sm:$0xff] (!%p588_p7)   ;;  %v733_v27 = vld [vmem:[%s943_s8 + $0x20] sm:$0xff] (!%p588_p7)   ;;  %v734_v28 = vld [vmem:[%s943_s8 + $0x28] sm:$0xff] (!%p588_p7)  }
 0x132   : > { %641 = vmatpush3.bf16.msra.mxu0 (!%p588_p7), %v729_v22  ;;  %v735_v29 = vld [vmem:[%s943_s8 + $0x30] sm:$0xff] (!%p588_p7)   ;;  %v736_v30 = vld [vmem:[%s943_s8 + $0x38] sm:$0xff] (!%p588_p7)   ;;  %v376_v34 = vshrl.u32 (!%p588_p7), %v375_v33, 7 }
 0x133   : > { %642 = vmatprep.subr.bf16.mxu0 (!%p588_p7), %v824_v23 }
 0x134   : > { %v377_v35 = vsub.s32 (!%p588_p7), 0, %v376_v34 }
 0x135   : > { %v356_v31 = vld [vmem:[#allocation2] sm:$0xff] (!%p588_p7) }
 0x136   : > { %643 = vmatpush3.bf16.msra.mxu0 (!%p588_p7), %v730_v24  ;;  %v357_v32 = vpack.c.bf16 (!%p588_p7), %v356_v31, %v356_v31  ;;  %v378_v36 = vrot.slane (!%p588_p7), %v954_v0, %v377_v35 }
 0x137   : > { %644 = vmatprep.subr.bf16.mxu0 (!%p588_p7), %v824_v23 }
 0x13a   : > { %645 = vmatpush3.bf16.msra.mxu0 %v731_v25 }
 0x13b   : > { %646 = vmatprep.subr.bf16.mxu0 %v824_v23 }
 0x13e   : > { %647 = vmatpush3.bf16.msra.mxu0 %v732_v26 }
 0x13f   : > { %648 = vmatprep.subr.bf16.mxu0 %v824_v23 }
 0x142   : > { %649 = vmatpush3.bf16.msra.mxu0 %v733_v27 }
 0x143   : > { %650 = vmatprep.subr.bf16.mxu0 %v824_v23 }
 0x146   : > { %651 = vmatpush3.bf16.msra.mxu0 %v734_v28 }
 0x147   : > { %652 = vmatprep.subr.bf16.mxu0 %v824_v23 }
 0x14a   : > { %653 = vmatpush3.bf16.msra.mxu0 %v735_v29 }
 0x14b   : > { %654 = vmatprep.subr.bf16.mxu0 %v824_v23 }
 0x14e   : > { %655 = vmatpush3.bf16.msra.mxu0 %v736_v30 }
 0x151   : > { %657 = vmatmul.mubr.bf16.vlgmr.msra.gmra.mrb[0].mxu0 %v357_v32 }
 0x224   : > { %v462_v37 = vpop.f32.mrb[0].mxu0 }
 0x225   : > { %v463_v38 = vadd.f32 %v462_v37, %v378_v36  ;;  %v658_v39 = vpop.f32.mrb[1].mxu0 }
 0x226   : > { %v465_v40 = vpop.f32.mrb[2].mxu0 }
 0x227   : > { %v468_v41 = vmax.f32 %v463_v38, 0.0  ;;  %v659_v42 = vpop.f32.mrb[3].mxu0 }
 0x229   : > { %469 = vst [vmem:[#allocation2] sm:$0xff] %v468_v41 }
 0x22a PF: > { %p597_p5 = scmp.ne.s32.totalorder %s809_s15, 3 }
 0x22c   : > { %473 = sbr.rel (%p597_p5) target bundleno = 563 (0x233), region = 48 }
 0x230   : > { %v474_v43 = vld [vmem:[#allocation2] sm:$0xff] (!%p597_p5) }
 0x231   : > { %475 = vst [vmem:[%s1004_s3] sm:$0xff] (!%p597_p5), %v474_v43 }
 0x233 PF: > { %s16_s17 = sadd.s32 1, %s817_s17   ;;  %s1008_s12 = smov %s801_s13 }
 0x234   : > { %p13_p6 = scmp.ge.s32.totalorder %s16_s17, 6   ;;  %s1009_s13 = smov %s805_s14 }
 0x235   : > { %s1010_s14 = smov %s895_s24  ;;  %s1011_s15 = smov %s813_s16 }
 0x236   : > { %s1012_s16 = smov %s1014_s19  ;;  %15 = sbr.rel (!%p13_p6) target bundleno = 4 (0x4), region = 90 }
 0x23d   :  { %495 = vsyncpa [#allocation4], 1 }
 0x23e   :  { %497 = vsyncpa [#allocation4 + $0x1], 1 }

</bundles_post_ra>
